<compile_context>
chip_gen: v7x
topology: tpu7x:2x2x1
jax: 0.10.0
libtpu: 0.0.40
codegen_flags: <defaults>
</compile_context>

<pallas_src>
import functools

import numpy as np
import jax
import jax.numpy as jnp
from jax.experimental import pallas as pl
from jax.experimental.pallas import tpu as pltpu


def _pick_tile(n, candidates=(512, 256, 128)):
    """Largest lane/MXU-friendly tile that divides n; fall back to full n."""
    for t in candidates:
        if n % t == 0:
            return t
    return n


# ---------------------------------------------------------------------------
# Kernel 1: pairwise Euclidean distance matrix (MXU matmul + broadcast/clamp)
# ---------------------------------------------------------------------------
def _dist_kernel(xa_ref, xb_ref, sqa_ref, sqb_ref, o_ref):
    # Gram tile on the MXU, f32 accumulation (matches the reference addmm_).
    gram = jax.lax.dot_general(
        xa_ref[...],
        xb_ref[...],
        (((1,), (1,)), ((), ())),
        preferred_element_type=jnp.float32,
    )                                                        # (tm, tn)
    d2 = sqa_ref[...] + sqb_ref[...] - 2.0 * gram            # (tm,1)+(1,tn)+(tm,tn)
    o_ref[...] = jnp.sqrt(jnp.maximum(d2, 1e-12))


def euclidean_dist(x):
    n, d = x.shape
    x = x.astype(jnp.float32)
    sq_col = jnp.sum(x * x, axis=1, keepdims=True)           # (n, 1) = ||x_i||^2
    sq_row = jnp.transpose(sq_col)                            # (1, n) = ||x_j||^2

    tm = tn = _pick_tile(n)
    grid = (n // tm, n // tn)
    cost = pl.CostEstimate(
        flops=2 * n * n * d + 4 * n * n,
        transcendentals=n * n,
        bytes_accessed=4 * (n * d * (grid[0] + grid[1]) + n * n + 2 * n * grid[0]),
    )
    return pl.pallas_call(
        _dist_kernel,
        out_shape=jax.ShapeDtypeStruct((n, n), jnp.float32),
        grid=grid,
        in_specs=[
            pl.BlockSpec((tm, d), lambda i, j: (i, 0)),
            pl.BlockSpec((tn, d), lambda i, j: (j, 0)),
            pl.BlockSpec((tm, 1), lambda i, j: (i, 0)),
            pl.BlockSpec((1, tn), lambda i, j: (0, j)),
        ],
        out_specs=pl.BlockSpec((tm, tn), lambda i, j: (i, j)),
        compiler_params=pltpu.CompilerParams(
            dimension_semantics=("parallel", "parallel"),
            vmem_limit_bytes=32 << 20,
        ),
        cost_estimate=cost,
    )(x, x, sq_col, sq_row)


# ---------------------------------------------------------------------------
# Kernel 2: per-anchor loss, anchors on lanes, scalar sum accumulated in SMEM
# ---------------------------------------------------------------------------
def _softplus(z):
    # numerically stable log(1 + exp(z)) = max(z, 0) + log(1 + exp(-|z|))
    return jnp.maximum(z, 0.0) + jnp.log(1.0 + jnp.exp(-jnp.abs(z)))


def _loss_kernel(pos_ref, neg_ref, thr_ref, o_ref, acc_ref, *, margin, inv_n):
    i = pl.program_id(0)

    @pl.when(i == 0)
    def _init():
        acc_ref[0, 0] = 0.0

    pos = pos_ref[...]                                       # (P, tn) sorted positives
    neg = neg_ref[...]                                       # (K, tn) sampled negatives
    thr = thr_ref[...]                                       # (1, tn) pos_hardest + 0.05

    # pos_loss = 0.5 * mean_p log(1 + exp(-2 * (margin - pos)))
    pos_terms = _softplus(-2.0 * (margin - pos))
    pos_loss = (0.5 / pos.shape[0]) * jnp.sum(pos_terms, axis=0, keepdims=True)

    # keep only negatives below the threshold; masked mean of
    # 0.05 * log(1 + exp(20 * (margin - neg))).
    keep = neg < thr                                          # (K, tn)
    neg_terms = jnp.where(keep, _softplus(20.0 * (margin - neg)), 0.0)
    cnt = jnp.sum(keep.astype(jnp.float32), axis=0, keepdims=True)    # (1, tn)
    neg_loss = 0.05 * jnp.sum(neg_terms, axis=0, keepdims=True) / jnp.maximum(cnt, 1.0)

    # Anchor contributes only if >= 1 sampled negative survived the filter
    # (matches the `if len(neg_pair) > 0` branch).
    row = jnp.where(cnt > 0.0, pos_loss + neg_loss, 0.0)      # (1, tn)
    acc_ref[0, 0] += jnp.sum(row)

    @pl.when(i == pl.num_programs(0) - 1)
    def _finalize():
        o_ref[0, 0] = acc_ref[0, 0] * inv_n


def per_anchor_loss_sum(pos_t, neg_t, thr_t, margin, n):
    """Returns sum_i row_loss_i / n as a scalar.  Inputs are (P,n),(K,n),(1,n)."""
    p = pos_t.shape[0]
    k = neg_t.shape[0]
    tn = _pick_tile(n)
    grid = (n // tn,)
    kernel = functools.partial(_loss_kernel, margin=float(margin), inv_n=1.0 / n)
    out = pl.pallas_call(
        kernel,
        out_shape=jax.ShapeDtypeStruct((1, 1), jnp.float32),
        grid=grid,
        in_specs=[
            pl.BlockSpec((p, tn), lambda i: (0, i)),
            pl.BlockSpec((k, tn), lambda i: (0, i)),
            pl.BlockSpec((1, tn), lambda i: (0, i)),
        ],
        out_specs=pl.BlockSpec(memory_space=pltpu.MemorySpace.SMEM),
        scratch_shapes=[pltpu.SMEM((1, 1), jnp.float32)],
        compiler_params=pltpu.CompilerParams(
            dimension_semantics=("arbitrary",),   # scalar accumulator across tiles
            vmem_limit_bytes=32 << 20,
        ),
    )(pos_t, neg_t, thr_t)
    return out[0, 0]


# ---------------------------------------------------------------------------
# Forward pass (glue in plain JAX)
# ---------------------------------------------------------------------------
def dist_weight_neighbour_loss(inputs, targets, key, margin=1.0):
    n = inputs.shape[0]
    dist_mat = euclidean_dist(inputs)                        # (n, n), Pallas

    # Balanced-class bookkeeping (same assumption the reference's .resize() makes).
    targets_np = np.asarray(targets)
    counts = np.bincount(targets_np)
    num_instances = int(counts[targets_np[0]])
    assert np.all(counts[counts > 0] == num_instances), "classes must be balanced"
    num_pos = num_instances - 1                              # positives per anchor
    num_neg = n - num_instances                              # negatives per anchor

    same = targets[:, None] == targets[None, :]
    eye = jnp.eye(n, dtype=bool)
    pos_mask = same & (~eye)
    neg_mask = ~same

    def gather_masked(mat, mask, k):
        # Emulates torch.masked_select row-major order: True columns first,
        # preserving column order.
        order = jnp.argsort(jnp.where(mask, 0, 1), axis=1, stable=True)
        return jnp.take_along_axis(mat, order[:, :k], axis=1)

    pos_dist = gather_masked(dist_mat, pos_mask, num_pos)    # (n, num_pos)
    neg_dist = gather_masked(dist_mat, neg_mask, num_neg)    # (n, num_neg)

    pos_sorted = jnp.sort(pos_dist, axis=1)[:, :3]           # 3 hardest (smallest) positives
    neg_sorted = jnp.sort(neg_dist, axis=1)

    # GaussDistribution over the full negative set of each anchor.  The
    # reference weights negatives by exp((x-mean)^2 / (2*std^2)); since only
    # the log of that weight is needed for Gumbel-top-k we keep the quadratic
    # directly (no exp/log round trip, no overflow, eps guards std == 0).
    neg_mean = jnp.mean(neg_sorted, axis=1, keepdims=True)
    neg_var = jnp.mean((neg_sorted - neg_mean) ** 2, axis=1, keepdims=True)
    log_prob = (neg_sorted - neg_mean) ** 2 / (2.0 * neg_var + 1e-12)

    # TODO(synk): torch.multinomial(prob, k, replacement=False) reproduced via
    # Gumbel top-k with jax.random -- same distribution, different RNG stream.
    g = jax.random.gumbel(key, neg_sorted.shape, dtype=jnp.float32)
    scores = log_prob + g
    idx = jnp.argsort(-scores, axis=1)[:, :num_pos]
    neg_sampled = jnp.take_along_axis(neg_sorted, idx, axis=1)  # (n, num_pos)

    # Lane-dense layout for the loss kernel: anchors on lanes.
    pos_t = jnp.transpose(pos_sorted)                        # (P, n)
    neg_t = jnp.transpose(neg_sampled)                       # (K, n)
    thr_t = jnp.transpose(pos_sorted[:, -1:] + 0.05)         # (1, n)

    # sum over contributing anchors / n ; == 0.0 when no anchor contributes,
    # matching the `0.0 * mean(pos_pair)` fallback.
    return per_anchor_loss_sum(pos_t, neg_t, thr_t, margin, n)


if __name__ == "__main__":
    key = jax.random.PRNGKey(0)
    k_x, k_samp = jax.random.split(key)

    n, d = 8, 32                                             # 2 classes x 4 instances
    inputs = jax.random.normal(k_x, (n, d), dtype=jnp.float32)
    targets = jnp.array([0, 0, 0, 0, 1, 1, 1, 1], dtype=jnp.int32)

    loss = dist_weight_neighbour_loss(inputs, targets, k_samp, margin=1.0)
    jax.block_until_ready(loss)
    assert loss.shape == () and bool(jnp.isfinite(loss))
    print("KERNEL_OK")
</pallas_src>

<mosaic_0001>
module attributes {stable_mosaic.version = 11 : i64} {
  func.func @_dist_kernel(%arg0: i32, %arg1: i32, %arg2: memref<8x32xf32, #tpu.memory_space<vmem>>, %arg3: memref<8x32xf32, #tpu.memory_space<vmem>>, %arg4: memref<8x1xf32, #tpu.memory_space<vmem>>, %arg5: memref<1x8xf32, #tpu.memory_space<vmem>>, %arg6: memref<8x8xf32, #tpu.memory_space<vmem>>) attributes {dimension_semantics = [#tpu.dimension_semantics<parallel>, #tpu.dimension_semantics<parallel>], iteration_bounds = array<i64: 1, 1>, scalar_prefetch = 0 : i64, scratch_operands = 0 : i64, tpu.core_type = #tpu.core_type<tc>, window_params = [{transform_indices = @transform_0, window_bounds = array<i64: 8, 32>}, {transform_indices = @transform_1, window_bounds = array<i64: 8, 32>}, {transform_indices = @transform_2, window_bounds = array<i64: 8, 1>}, {transform_indices = @transform_3, window_bounds = array<i64: 1, 8>}, {transform_indices = @transform_4, window_bounds = array<i64: 8, 8>}]} {
    %c0 = arith.constant 0 : index
    %c0_0 = arith.constant 0 : index
    %0 = vector.load %arg2[%c0, %c0_0] : memref<8x32xf32, #tpu.memory_space<vmem>>, vector<8x32xf32>
    %c0_1 = arith.constant 0 : index
    %c0_2 = arith.constant 0 : index
    %1 = vector.load %arg3[%c0_1, %c0_2] : memref<8x32xf32, #tpu.memory_space<vmem>>, vector<8x32xf32>
    %cst = arith.constant dense<0.000000e+00> : vector<8x8xf32>
    %2 = tpu.matmul %0, %1, %cst {dimension_numbers = #tpu.dot_dimension_numbers<[1], [1], [0], [0], [0, 0, 1, 0], [], []>} : vector<8x32xf32>, vector<8x32xf32>, vector<8x8xf32> -> vector<8x8xf32>
    %c0_3 = arith.constant 0 : index
    %c0_4 = arith.constant 0 : index
    %3 = vector.load %arg4[%c0_3, %c0_4] : memref<8x1xf32, #tpu.memory_space<vmem>>, vector<8x1xf32>
    %c0_5 = arith.constant 0 : index
    %c0_6 = arith.constant 0 : index
    %4 = vector.load %arg5[%c0_5, %c0_6] : memref<1x8xf32, #tpu.memory_space<vmem>>, vector<1x8xf32>
    %5 = vector.broadcast %3 : vector<8x1xf32> to vector<8x8xf32>
    %6 = vector.broadcast %4 : vector<1x8xf32> to vector<8x8xf32>
    %7 = arith.addf %5, %6 : vector<8x8xf32>
    %cst_7 = arith.constant 2.000000e+00 : f32
    %8 = vector.broadcast %cst_7 : f32 to vector<8x8xf32>
    %9 = arith.mulf %8, %2 : vector<8x8xf32>
    %10 = arith.subf %7, %9 : vector<8x8xf32>
    %cst_8 = arith.constant 9.99999996E-13 : f32
    %11 = vector.broadcast %cst_8 : f32 to vector<8x8xf32>
    %12 = arith.maximumf %10, %11 : vector<8x8xf32>
    %13 = math.sqrt %12 : vector<8x8xf32>
    %c0_9 = arith.constant 0 : index
    %c0_10 = arith.constant 0 : index
    %14 = vector.load %arg6[%c0_9, %c0_10] : memref<8x8xf32, #tpu.memory_space<vmem>>, vector<8x8xf32>
    tpu.vector_store %arg6[%c0_9, %c0_10], %13 {strides = array<i32>} : memref<8x8xf32, #tpu.memory_space<vmem>>, vector<8x8xf32>,
    return
  }
  func.func @transform_0(%arg0: i32, %arg1: i32) -> (i32, i32) {
    %c0_i32 = arith.constant 0 : i32
    %c0_i32_0 = arith.constant 0 : i32
    return %arg0, %c0_i32 : i32, i32
  }
  func.func @transform_1(%arg0: i32, %arg1: i32) -> (i32, i32) {
    %c0_i32 = arith.constant 0 : i32
    %c0_i32_0 = arith.constant 0 : i32
    return %arg1, %c0_i32 : i32, i32
  }
  func.func @transform_2(%arg0: i32, %arg1: i32) -> (i32, i32) {
    %c0_i32 = arith.constant 0 : i32
    %c0_i32_0 = arith.constant 0 : i32
    return %arg0, %c0_i32 : i32, i32
  }
  func.func @transform_3(%arg0: i32, %arg1: i32) -> (i32, i32) {
    %c0_i32 = arith.constant 0 : i32
    %c0_i32_0 = arith.constant 0 : i32
    return %c0_i32, %arg1 : i32, i32
  }
  func.func @transform_4(%arg0: i32, %arg1: i32) -> (i32, i32) {
    %c0_i32 = arith.constant 0 : i32
    return %arg0, %arg1 : i32, i32
  }
}

</mosaic_0001>

<bundles_post_ra>
// kernel: tpu_custom_call.1
= control target key start
LH: loop header
LB: loop body
LE: loop exit
PB: predicated region body
PF: predicated region fallthrough
CT: control target
= control target key end

     0   :  { %9 = vsyncpa [#allocation3], 0  ;;  %s279_s0 = inlined_call_operand.vmem [shape: f32[8,32], index: 0, kind: input, shape index: {}]   ;;  %s280_s1 = inlined_call_operand.hbm [shape: f32[8,32], index: 1, kind: input, shape index: {}]   ;;  %s281_s2 = inlined_call_operand.vmem [shape: f32[8,1], index: 2, kind: input, shape index: {}]   ;;  %s282_s3 = inlined_call_operand.vmem [shape: f32[1,8], index: 3, kind: input, shape index: {}]   ;;  %s283_s4 = inlined_call_operand.hbm [shape: f32[8,8], index: 4, kind: output, shape index: {}]  }
   0x1   :  { %10 = vsyncpa [#allocation4], 0  ;;  %s216_s15 = smov [#allocation2]   ;;  %s168_s19 = scalar_lea.hbm %s280_s1, 128 }
   0x2   :  { %s19_s16 = sshll.u32 %s216_s15, 4  ;;  %p169_p0 = scmp.ne.s32.totalorder %s280_s1, %s168_s19  ;;  %s20_s16 = int_to_ptr.vmem [resolvable:$true] %s19_s16 }
   0x3   :  { %p172_p1 = scmp.lt.u32.totalorder %s168_s19, %s280_s1 }
   0x5   :  { %p174_p2 = pnand %p172_p1, %p169_p0 }
   0x7   :  { %177 = shalt.err (!%p174_p2)
}
   0x8   :  { %s178_s24 = scalar_lea.vmem %s20_s16, 128  ;;  %p183_p4 = scmp.lt.s32.totalorder %s20_s16, %s20_s16 }
   0x9   :  { %p179_p3 = scmp.ne.s32.totalorder %s20_s16, %s178_s24  ;;  %p184_p5 = scmp.lt.s32.totalorder %s178_s24, %s178_s24 }
   0xb   :  { %p185_p6 = por %p184_p5, %p183_p4 }
   0xd   :  { %p186_p7 = pnand %p185_p6, %p179_p3 }
   0xf   :  { %189 = shalt.err (!%p186_p7)
}
  0x10   :  { %22 = dma.hbm_to_vmem [thread:$0]  %s280_s1, 128, %s20_s16, [#allocation3]  }
  0x11   :  { %212 = dma.done.wait [#allocation3], 128  }
  0x12   :  { %213 = vsyncadd [#allocation3], 4294967168  ;;  %v217_v0 = vmov 0.0   ;;  %vm218_vm0 = vmmov 0   ;;  %v219_v1 = vmov 0   ;;  %vm32_vm1 = vcmask 261120  }
  0x13   :  { %155 = vmatprep.subr.mxu0 %v217_v0  ;;  %157 = vmatprep.mubr.msk.f32.mxu0 %vm218_vm0, %v217_v0  ;;  %v31_v2 = vld [vmem:[#allocation2] sm:$0xff]  ;;  %vm133_vm3 = vcmask 64512  }
  0x14   :  { %165 = vset.pattern.permute.xlu0 %v219_v1  ;;  %v109_v3 = vld [vmem:[%s281_s2] sm:$0xff]  ;;  %156 = vmatpush3.xpose.msk.msra.mxu0 %vm32_vm1, %v31_v2  ;;  %s220_s2 = smov [#allocation5]  }
  0x15   :  { %v30_v4 = vld [vmem:[%s279_s0] sm:$0xff]  ;;  %113 = vperm.xlu0 %165, %v109_v3   ;;  %s141_s6 = sshll.u32 %s220_s2, 4  ;;  %s142_s6 = int_to_ptr.vmem [resolvable:$true] %s141_s6 }
  0x16   :  { %v152_v5 = vld [vmem:[%s282_s3] ss:$0 sm:$0xff]  ;;  %s190_s0 = scalar_lea.vmem %s142_s6, 128  ;;  %p195_p9 = scmp.lt.s32.totalorder %s142_s6, %s142_s6 }
  0x17   :  { %158 = vmatmul.mubr.msk.f32.vlgmr.msra.gmra.mrb[0].mxu0 %vm32_vm1, %v30_v4  ;;  %p191_p8 = scmp.ne.s32.totalorder %s142_s6, %s190_s0  ;;  %p196_p10 = scmp.lt.s32.totalorder %s190_s0, %s190_s0 }
  0x19   :  { %p197_p11 = por %p196_p10, %p195_p9 }
  0x1b   :  { %p198_p12 = pnand %p197_p11, %p191_p8 }
  0x94   :  { %v114_v6 = vpop.permute.xlu0 %113 }
  0x95   :  { %v122_v7 = vadd.f32 %v152_v5, %v114_v6 }
  0xea   :  { %v105_v8 = vpop.f32.mrb[0].mxu0 }
  0xeb   :  { %v123_v9 = vmul.f32 2.0, %v105_v8  ;;  %v159_v10 = vpop.f32.mrb[1].mxu0 }
  0xed   :  { %v124_v11 = vsub.f32 %v122_v7, %v123_v9 }
  0xef   :  { %v125_v12 = vmax.f32 %v124_v11, 1e-12 }
  0xf1   :  { %166 = vrsqrt.f32 %v125_v12  ;;  %vm128_vm2 = vcmp.eq.f32.partialorder %v125_v12, inf  ;;  %v131_v15 = vand.u32 2147483648, %v125_v12  ;;  %vm130_vm4 = vcmp.eq.f32.partialorder %v125_v12, 0.0 }
  0xfb   :  { %v167_v13 = vpop.eup %166 }
  0xfc   :  { %v127_v14 = vmul.f32 %v167_v13, %v125_v12 }
  0xfe   :  { %v129_v16 = vsel %vm128_vm2, %v125_v12, %v127_v14 }
  0xff   :  { %v132_v17 = vsel %vm130_vm4, %v131_v15, %v129_v16 }
 0x100   :  { %134 = vst.msk [vmem:[#allocation5] sm:$0xff] %vm133_vm3, %v132_v17 }
 0x101   :  { %201 = shalt.err (!%p198_p12)
}
 0x102   :  { %s202_s8 = scalar_lea.hbm %s283_s4, 128 }
 0x103   :  { %p203_p13 = scmp.ne.s32.totalorder %s283_s4, %s202_s8  ;;  %p206_p0 = scmp.lt.u32.totalorder %s202_s8, %s283_s4 }
 0x105   :  { %p208_p1 = pnand %p206_p0, %p203_p13 }
 0x107   :  { %211 = shalt.err (!%p208_p1)
}
 0x108   :  { %144 = dma.vmem_to_hbm [thread:$0]  %s142_s6, 128, %s283_s4, [#allocation4]  }
 0x109   :  { %214 = dma.done.wait [#allocation4], 128  }
 0x10a   :  { %215 = vsyncadd [#allocation4], 4294967168 }
 0x10b   :  { %148 = vsyncpa [#allocation3], 1 }
 0x10c   :  { %149 = vsyncpa [#allocation4], 1 }

</bundles_post_ra>
